<compile_context>
chip_gen: v7x
topology: tpu7x:2x2x1
jax: 0.10.0
libtpu: 0.0.40
codegen_flags: <defaults>
</compile_context>

<pallas_src>
import functools

import jax
import jax.numpy as jnp
from jax.experimental import pallas as pl
from jax.experimental.pallas import tpu as pltpu


def _activation(name: str):
    name = name.lower()
    if name == "relu":
        return lambda h: jnp.maximum(h, 0.0)
    if name == "gelu":
        return lambda h: jax.nn.gelu(h, approximate=False)
    if name in ("fastgelu", "fast_gelu"):
        return lambda h: jax.nn.gelu(h, approximate=True)
    if name == "silu":
        return jax.nn.silu
    raise ValueError(f"unsupported activation: {name}")


def _round_up(v: int, m: int) -> int:
    return (v + m - 1) // m * m


def _pick_tn(n_pad: int, cap: int) -> int:
    """Largest tn <= cap that divides n_pad; prefer multiples of 256 (MXU)."""
    cap = min(max(cap, 128), n_pad)
    for mult in (256, 128):
        start = (cap // mult) * mult
        for tn in range(start, 0, -mult):
            if n_pad % tn == 0:
                return tn
    return n_pad


def _ffn_kernel(x_ref, w1_ref, b1_ref, w2_ref, b2_ref, o_ref, acc_ref,
                *, act_fn, compute_dtype):
    n = pl.program_id(1)

    @pl.when(n == 0)
    def _init():
        acc_ref[...] = jnp.zeros_like(acc_ref)

    # In-kernel cast (no-op for bf16/f32 inputs, fp16 -> bf16 otherwise).
    x = x_ref[...].astype(compute_dtype)
    w1 = w1_ref[...].astype(compute_dtype)

    # matmul 1 (MXU, f32 acc) + bias1 + activation, on one N-chunk only.
    h = jnp.dot(x, w1, preferred_element_type=jnp.float32)
    h = act_fn(h + b1_ref[...])

    # matmul 2 partial product accumulated into the f32 VMEM accumulator.
    w2 = w2_ref[...].astype(compute_dtype)
    acc_ref[...] += jnp.dot(h.astype(compute_dtype), w2,
                            preferred_element_type=jnp.float32)

    @pl.when(n == pl.num_programs(1) - 1)
    def _finalize():
        o_ref[...] = (acc_ref[...] + b2_ref[...]).astype(o_ref.dtype)


def npu_ffn(x, weight1, weight2, activation,
            expert_tokens=None, expert_tokens_index=None,
            bias1=None, bias2=None, scale=None, offset=None,
            deq_scale1=None, deq_scale2=None,
            antiquant_scale1=None, antiquant_scale2=None,
            antiquant_offset1=None, antiquant_offset2=None,
            inner_precise=0, *, tile_m=512, tile_n=512,
            vmem_budget_bytes=44 * 2**20):
    # TODO(synk): MoE path (expert_tokens / expert_tokens_index) and the
    # quantized / antiquant paths are not implemented (no inputs exercise them).
    if any(a is not None for a in (expert_tokens, expert_tokens_index, scale,
                                   offset, deq_scale1, deq_scale2,
                                   antiquant_scale1, antiquant_scale2,
                                   antiquant_offset1, antiquant_offset2)):
        raise NotImplementedError("MoE / quantized npu_ffn paths not supported")
    del inner_precise

    M, K = x.shape
    K1, N = weight1.shape
    N1, K2 = weight2.shape
    assert K == K1 and N == N1 and K == K2

    out_dtype = x.dtype
    # TPU MXUs are native bf16; route fp16 operands through bf16 (f32 acc).
    # f32 inputs stay f32 (correct, but forfeits most of the MXU peak).
    compute_dtype = jnp.bfloat16 if x.dtype == jnp.float16 else x.dtype

    if bias1 is None:
        bias1 = jnp.zeros((N,), jnp.float32)
    if bias2 is None:
        bias2 = jnp.zeros((K,), jnp.float32)

    # --- token (M) tiling: round to the dtype's sublane packing -------------
    itemsize = jnp.dtype(x.dtype).itemsize
    m_sub = {2: 16, 1: 32}.get(itemsize, 8)
    tm = min(tile_m, _round_up(M, m_sub))
    # Give v7x's two TensorCores >= 2 parallel grid steps when M is sizeable.
    if M >= 256 and _round_up(M, tm) // tm < 2:
        tm_half = _round_up(-(-M // 2), m_sub)
        if tm_half < tm:
            tm = tm_half

    # --- intermediate (N) tiling: lane-align, avoid wasted padded columns ---
    n_pad = _round_up(N, 128)
    tn = _pick_tn(n_pad, tile_n)

    # --- VMEM budget (fits v7x's 64 MiB per-TC VMEM with headroom) ----------
    w_itemsize = jnp.dtype(weight1.dtype).itemsize
    out_itemsize = jnp.dtype(out_dtype).itemsize

    def footprint(tm_, tn_):
        return (2 * tm_ * K * itemsize            # x tiles (double-buffered)
                + 2 * K * tn_ * w_itemsize        # W1 chunks
                + 2 * tn_ * K * w_itemsize        # W2 chunks
                + 2 * 8 * tn_ * 4 + 2 * 8 * K * 4   # bias tiles
                + 2 * tm_ * K * out_itemsize      # output tiles
                + tm_ * K * 4)                    # f32 accumulator
    # TODO(synk): for very large K, additionally tile the output K dim so the
    # accumulator does not scale with the full hidden size.
    while footprint(tm, tn) > vmem_budget_bytes:
        if tn > 128:
            tn = _pick_tn(n_pad, max(128, tn // 2))
        elif tm > m_sub:
            tm = max(m_sub, _round_up(tm // 2, m_sub))
        else:
            break
    vmem_limit_bytes = int(max(footprint(tm, tn) + (8 << 20), 32 << 20))

    m_pad = _round_up(M, tm)

    # --- operand prep (native dtypes; casts happen inside the kernel) -------
    x_p = x if m_pad == M else jnp.pad(x, ((0, m_pad - M), (0, 0)))
    w1_p, w2_p = weight1, weight2
    b1_p = bias1.astype(jnp.float32).reshape(1, N)
    if n_pad != N:
        # Lane alignment requires padding when N % 128 != 0 (one extra HBM
        # pass over the weights; padded W2 rows are zero -> exact result).
        w1_p = jnp.pad(w1_p, ((0, 0), (0, n_pad - N)))
        w2_p = jnp.pad(w2_p, ((0, n_pad - N), (0, 0)))
        b1_p = jnp.pad(b1_p, ((0, 0), (0, n_pad - N)))
    b2_p = bias2.astype(jnp.float32).reshape(1, K)

    grid = (m_pad // tm, n_pad // tn)
    kernel = functools.partial(_ffn_kernel, act_fn=_activation(activation),
                               compute_dtype=compute_dtype)

    cost = pl.CostEstimate(
        flops=int(4 * m_pad * K * n_pad),
        transcendentals=0 if activation.lower() == "relu"
        else int(m_pad * n_pad),
        bytes_accessed=int(
            m_pad * K * itemsize
            + 2 * K * n_pad * w_itemsize * (m_pad // tm)  # weights re-streamed
            + m_pad * K * out_itemsize
            + (n_pad + K) * 4),
    )

    out = pl.pallas_call(
        kernel,
        out_shape=jax.ShapeDtypeStruct((m_pad, K), out_dtype),
        grid_spec=pltpu.PrefetchScalarGridSpec(
            num_scalar_prefetch=0,
            grid=grid,
            in_specs=[
                pl.BlockSpec((tm, K), lambda i, n: (i, 0)),   # x token tile
                pl.BlockSpec((K, tn), lambda i, n: (0, n)),   # W1 N-chunk
                pl.BlockSpec((1, tn), lambda i, n: (0, n)),   # bias1 chunk (f32)
                pl.BlockSpec((tn, K), lambda i, n: (n, 0)),   # W2 N-chunk
                pl.BlockSpec((1, K), lambda i, n: (0, 0)),    # bias2 (f32)
            ],
            out_specs=pl.BlockSpec((tm, K), lambda i, n: (i, 0)),
            scratch_shapes=[pltpu.VMEM((tm, K), jnp.float32)],
        ),
        compiler_params=pltpu.CompilerParams(
            dimension_semantics=("parallel", "arbitrary"),
            vmem_limit_bytes=vmem_limit_bytes),
        cost_estimate=cost,
    )(x_p, w1_p, b1_p, w2_p, b2_p)

    return out[:M] if m_pad != M else out


def _reference_ffn(x, w1, w2, activation, b1, b2):
    act = _activation(activation)
    h = act(x.astype(jnp.float32) @ w1.astype(jnp.float32)
            + b1.astype(jnp.float32))
    y = h @ w2.astype(jnp.float32) + b2.astype(jnp.float32)
    return y.astype(x.dtype)


if __name__ == "__main__":
    # Small FFN shapes: tokens=201 (exercises M padding + 2 token tiles),
    # hidden=128, intermediate=384 (exercises N-chunk streaming, no padding).
    M, K, N = 201, 128, 384
    dtype = jnp.bfloat16

    key = jax.random.PRNGKey(0)
    kx, kw1, kw2, kb1, kb2 = jax.random.split(key, 5)
    x = (jax.random.normal(kx, (M, K), jnp.float32) * 0.5).astype(dtype)
    w1 = (jax.random.normal(kw1, (K, N), jnp.float32) * 0.05).astype(dtype)
    w2 = (jax.random.normal(kw2, (N, K), jnp.float32) * 0.05).astype(dtype)
    b1 = (jax.random.normal(kb1, (N,), jnp.float32) * 0.1).astype(dtype)
    b2 = (jax.random.normal(kb2, (K,), jnp.float32) * 0.1).astype(dtype)

    # Run 1: relu, small tiles -> grid (2, 3): exercises streamed-N
    # accumulation, M padding and the 2-step parallel token axis.
    out = npu_ffn(x, w1, w2, "relu", bias1=b1, bias2=b2,
                  tile_m=128, tile_n=128)
    out = jax.block_until_ready(out)
    ref = _reference_ffn(x, w1, w2, "relu", b1, b2)
    assert out.shape == (M, K) and out.dtype == dtype
    assert jnp.allclose(out.astype(jnp.float32), ref.astype(jnp.float32),
                        atol=2e-2, rtol=2e-2)

    # Run 2: fastgelu with default (production) tile sizes -> single N chunk,
    # exercises the EUP activation path and the VMEM-budgeted defaults.
    out2 = npu_ffn(x, w1, w2, "fastgelu", bias1=b1, bias2=b2)
    out2 = jax.block_until_ready(out2)
    ref2 = _reference_ffn(x, w1, w2, "fastgelu", b1, b2)
    assert out2.shape == (M, K) and out2.dtype == dtype
    assert jnp.allclose(out2.astype(jnp.float32), ref2.astype(jnp.float32),
                        atol=2e-2, rtol=2e-2)

    print("KERNEL_OK")
</pallas_src>

<mosaic_0001>
module attributes {stable_mosaic.version = 11 : i64} {
  func.func @_ffn_kernel(%arg0: i32, %arg1: i32, %arg2: memref<128x128xbf16, #tpu.memory_space<vmem>>, %arg3: memref<128x128xbf16, #tpu.memory_space<vmem>>, %arg4: memref<1x128xf32, #tpu.memory_space<vmem>>, %arg5: memref<128x128xbf16, #tpu.memory_space<vmem>>, %arg6: memref<1x128xf32, #tpu.memory_space<vmem>>, %arg7: memref<128x128xbf16, #tpu.memory_space<vmem>>, %arg8: memref<128x128xf32, #tpu.memory_space<vmem>>) attributes {dimension_semantics = [#tpu.dimension_semantics<parallel>, #tpu.dimension_semantics<arbitrary>], iteration_bounds = array<i64: 2, 3>, scalar_prefetch = 0 : i64, scratch_operands = 1 : i64, tpu.core_type = #tpu.core_type<tc>, window_params = [{transform_indices = @transform_0, window_bounds = array<i64: 128, 128>}, {transform_indices = @transform_1, window_bounds = array<i64: 128, 128>}, {transform_indices = @transform_2, window_bounds = array<i64: 1, 128>}, {transform_indices = @transform_3, window_bounds = array<i64: 128, 128>}, {pipeline_mode = #tpu.pipeline_mode<synchronous>, transform_indices = @transform_4, window_bounds = array<i64: 1, 128>}, {transform_indices = @transform_5, window_bounds = array<i64: 128, 128>}]} {
    %c0_i32 = arith.constant 0 : i32
    %0 = arith.cmpi eq, %arg1, %c0_i32 : i32
    %1 = arith.extui %0 : i1 to i32
    %c0_i32_0 = arith.constant 0 : i32
    %2 = arith.cmpi ne, %1, %c0_i32_0 : i32
    scf.if %2 {
      %cst_15 = arith.constant 0.000000e+00 : f32
      %20 = vector.broadcast %cst_15 : f32 to vector<128x128xf32>
      %c0_16 = arith.constant 0 : index
      %c0_17 = arith.constant 0 : index
      %21 = vector.load %arg8[%c0_16, %c0_17] : memref<128x128xf32, #tpu.memory_space<vmem>>, vector<128x128xf32>
      tpu.vector_store %arg8[%c0_16, %c0_17], %20 {strides = array<i32>} : memref<128x128xf32, #tpu.memory_space<vmem>>, vector<128x128xf32>,
    } else {
    }
    %c0 = arith.constant 0 : index
    %c0_1 = arith.constant 0 : index
    %3 = vector.load %arg2[%c0, %c0_1] : memref<128x128xbf16, #tpu.memory_space<vmem>>, vector<128x128xbf16>
    %c0_2 = arith.constant 0 : index
    %c0_3 = arith.constant 0 : index
    %4 = vector.load %arg3[%c0_2, %c0_3] : memref<128x128xbf16, #tpu.memory_space<vmem>>, vector<128x128xbf16>
    %cst = arith.constant dense<0.000000e+00> : vector<128x128xf32>
    %5 = tpu.matmul %3, %4, %cst {dimension_numbers = #tpu.dot_dimension_numbers<[1], [0], [0], [1], [0, 0, 1, 1], [], []>} : vector<128x128xbf16>, vector<128x128xbf16>, vector<128x128xf32> -> vector<128x128xf32>
    %c0_4 = arith.constant 0 : index
    %c0_5 = arith.constant 0 : index
    %6 = vector.load %arg4[%c0_4, %c0_5] : memref<1x128xf32, #tpu.memory_space<vmem>>, vector<1x128xf32>
    %7 = vector.broadcast %6 : vector<1x128xf32> to vector<128x128xf32>
    %8 = arith.addf %5, %7 : vector<128x128xf32>
    %cst_6 = arith.constant 0.000000e+00 : f32
    %9 = vector.broadcast %cst_6 : f32 to vector<128x128xf32>
    %10 = arith.maximumf %8, %9 : vector<128x128xf32>
    %c0_7 = arith.constant 0 : index
    %c0_8 = arith.constant 0 : index
    %11 = vector.load %arg5[%c0_7, %c0_8] : memref<128x128xbf16, #tpu.memory_space<vmem>>, vector<128x128xbf16>
    %c0_9 = arith.constant 0 : index
    %c0_10 = arith.constant 0 : index
    %12 = vector.load %arg8[%c0_9, %c0_10] : memref<128x128xf32, #tpu.memory_space<vmem>>, vector<128x128xf32>
    %13 = arith.truncf %10 : vector<128x128xf32> to vector<128x128xbf16>
    %cst_11 = arith.constant dense<0.000000e+00> : vector<128x128xf32>
    %14 = tpu.matmul %13, %11, %cst_11 {dimension_numbers = #tpu.dot_dimension_numbers<[1], [0], [0], [1], [0, 0, 1, 1], [], []>} : vector<128x128xbf16>, vector<128x128xbf16>, vector<128x128xf32> -> vector<128x128xf32>
    %15 = arith.addf %12, %14 : vector<128x128xf32>
    %c0_12 = arith.constant 0 : index
    %c0_13 = arith.constant 0 : index
    %16 = vector.load %arg8[%c0_12, %c0_13] : memref<128x128xf32, #tpu.memory_space<vmem>>, vector<128x128xf32>
    tpu.vector_store %arg8[%c0_12, %c0_13], %15 {strides = array<i32>} : memref<128x128xf32, #tpu.memory_space<vmem>>, vector<128x128xf32>,
    %c2_i32 = arith.constant 2 : i32
    %17 = arith.cmpi eq, %arg1, %c2_i32 : i32
    %18 = arith.extui %17 : i1 to i32
    %c0_i32_14 = arith.constant 0 : i32
    %19 = arith.cmpi ne, %18, %c0_i32_14 : i32
    scf.if %19 {
      %c0_15 = arith.constant 0 : index
      %c0_16 = arith.constant 0 : index
      %20 = vector.load %arg8[%c0_15, %c0_16] : memref<128x128xf32, #tpu.memory_space<vmem>>, vector<128x128xf32>
      %c0_17 = arith.constant 0 : index
      %c0_18 = arith.constant 0 : index
      %21 = vector.load %arg6[%c0_17, %c0_18] : memref<1x128xf32, #tpu.memory_space<vmem>>, vector<1x128xf32>
      %22 = vector.broadcast %21 : vector<1x128xf32> to vector<128x128xf32>
      %23 = arith.addf %20, %22 : vector<128x128xf32>
      %24 = arith.truncf %23 : vector<128x128xf32> to vector<128x128xbf16>
      %c0_19 = arith.constant 0 : index
      %c0_20 = arith.constant 0 : index
      %25 = vector.load %arg7[%c0_19, %c0_20] : memref<128x128xbf16, #tpu.memory_space<vmem>>, vector<128x128xbf16>
      tpu.vector_store %arg7[%c0_19, %c0_20], %24 {strides = array<i32>} : memref<128x128xbf16, #tpu.memory_space<vmem>>, vector<128x128xbf16>,
    } else {
    }
    return
  }
  func.func @transform_0(%arg0: i32, %arg1: i32) -> (i32, i32) {
    %c0_i32 = arith.constant 0 : i32
    %c0_i32_0 = arith.constant 0 : i32
    return %arg0, %c0_i32 : i32, i32
  }
  func.func @transform_1(%arg0: i32, %arg1: i32) -> (i32, i32) {
    %c0_i32 = arith.constant 0 : i32
    %c0_i32_0 = arith.constant 0 : i32
    return %c0_i32, %arg1 : i32, i32
  }
  func.func @transform_2(%arg0: i32, %arg1: i32) -> (i32, i32) {
    %c0_i32 = arith.constant 0 : i32
    %c0_i32_0 = arith.constant 0 : i32
    return %c0_i32, %arg1 : i32, i32
  }
  func.func @transform_3(%arg0: i32, %arg1: i32) -> (i32, i32) {
    %c0_i32 = arith.constant 0 : i32
    %c0_i32_0 = arith.constant 0 : i32
    return %arg1, %c0_i32 : i32, i32
  }
  func.func @transform_4(%arg0: i32, %arg1: i32) -> (i32, i32) {
    %c0_i32 = arith.constant 0 : i32
    %c0_i32_0 = arith.constant 0 : i32
    %c0_i32_1 = arith.constant 0 : i32
    return %c0_i32, %c0_i32_0 : i32, i32
  }
  func.func @transform_5(%arg0: i32, %arg1: i32) -> (i32, i32) {
    %c0_i32 = arith.constant 0 : i32
    %c0_i32_0 = arith.constant 0 : i32
    return %arg0, %c0_i32 : i32, i32
  }
}

</mosaic_0001>

<bundles_post_ra>
// kernel: tpu_custom_call.1
= control target key start
LH: loop header
LB: loop body
LE: loop exit
PB: predicated region body
PF: predicated region fallthrough
CT: control target
= control target key end

     0   :  { %s2152_s0 = inlined_call_operand.hbm [shape: bf16[256,128], index: 0, kind: input, shape index: {}]   ;;  %s2153_s1 = inlined_call_operand.hbm [shape: bf16[128,384], index: 1, kind: input, shape index: {}]   ;;  %s2154_s2 = inlined_call_operand.vmem [shape: f32[1,384], index: 2, kind: input, shape index: {}]   ;;  %s2155_s3 = inlined_call_operand.hbm [shape: bf16[384,128], index: 3, kind: input, shape index: {}]   ;;  %s2156_s4 = inlined_call_operand.vmem [shape: f32[1,128], index: 4, kind: input, shape index: {}]   ;;  %s2157_s5 = inlined_call_operand.hbm [shape: bf16[256,128], index: 5, kind: output, shape index: {}]  }
   0x1   :  { %2174 = sst [smem:[#allocation21_spill]] %s2153_s1 }
   0x2   :  { %2175 = sst [smem:[#allocation22_spill]] %s2156_s4 }
   0x3   :  { %2176 = sst [smem:[#allocation23_spill]] %s2157_s5 }
   0x4   :  { %10 = vsyncpa [#allocation4], 0 }
   0x5   :  { %12 = vsyncpa [#allocation4 + $0x1], 0 }
   0x6   :  { %13 = vsyncpa [#allocation7], 0 }
   0x7   :  { %15 = vsyncpa [#allocation7 + $0x1], 0 }
   0x8   :  { %16 = vsyncpa [#allocation5], 0 }
   0x9   :  { %18 = vsyncpa [#allocation5 + $0x1], 0  ;;  %s1735_s18 = smov 0   ;;  %s1737_s19 = smov 0  }
   0xa   :  { %s1739_s20 = smov 0   ;;  %s1741_s21 = smov 0  }
   0xb   :  { %s1743_s22 = smov 0   ;;  %s1745_s23 = smov 0  }
   0xc   :  { %s1747_s24 = smov 0   ;;  %s1749_s25 = smov 0  }
   0xd   :  { %s1751_s26 = smov 0   ;;  %s1753_s27 = smov 0  }
   0xe   :  { %s1755_s28 = smov 0  }
   0xf LB: > { %2177 = sst [smem:[#allocation13_spill]] %s1661_s20  ;;  %s33_s29 = sadd.s32 1, %s1685_s26  ;;  %s1693_s28 = sphi %s1755_s28, %s24_s28   ;;  %s1689_s27 = sphi %s1753_s27, %s2217_s27   ;;  %s1685_s26 = sphi %s1751_s26, %s2223_s26   ;;  %s1681_s25 = sphi %s1749_s25, %s2215_s25   ;;  %s1677_s24 = sphi %s1747_s24, %s2222_s24   ;;  %s1673_s23 = sphi %s1745_s23, %s2214_s23   ;;  %s1669_s22 = sphi %s1743_s22, %s2221_s22   ;;  %s1665_s21 = sphi %s1741_s21, %s2220_s21   ;;  %s1661_s20 = sphi %s1739_s20, %s2212_s20   ;;  %s1657_s19 = sphi %s1737_s19, %s2219_s19   ;;  %s1653_s18 = sphi %s1735_s18, %s2218_s18  }
  0x10   : > { %2178 = sst [smem:[#allocation14_spill]] %s1673_s23  ;;  %p2160_p0 = scmp.eq.s32.totalorder %s1693_s28, 0 }
  0x11   : > { %2179 = sst [smem:[#allocation15_spill]] %s1681_s25  ;;  %p1792_p1 = scmp.ge.s32.totalorder %s33_s29, 3 }
  0x12   : > { %2180 = sst [smem:[#allocation16_spill]] %s1689_s27  ;;  %s69_s6 = sadd.s32 1, %s1661_s20 }
  0x13   : > { %p76_p2 = scmp.ne.s32.totalorder %s1661_s20, %s1657_s19  ;;  %s2225_s29 = smov (%p1792_p1, %s33_s29), 0 }
  0x14   : > { %2182 = sst [smem:[#allocation17_spill]] %s2225_s29  ;;  %s66_s7 = ssub.s32 %s1685_s26, %s2225_s29 }
  0x15   : > { %p78_p4 = por %p76_p2, %p2160_p0  ;;  %p2159_p5 = scmp.lt.s32.totalorder %s1693_s28, 6 }
  0x16   : > { %p67_p6 = scmp.eq.s32.totalorder %s66_s7, 0  ;;  %s229_s8 = sand.u32 1, %s1693_s28  }
  0x17   : > { %s231_s10 = sand.u32 1, %s1661_s20   ;;  %s1115_s12 = sshll.u32 %s1685_s26, 6 }
  0x18   : > { %s1812_s9 = scalar_select %p67_p6, %s1661_s20, %s69_s6  }
  0x19   : > { %s1815_s11 = sshll.u32 %s231_s10, 6  ;;  %s2184_s1 = sld [smem:[#allocation21_spill]] }
  0x1a   : > { %2183 = sst [smem:[#allocation18_spill]] %s1812_s9  ;;  %s233_s16 = scalar_lea.vmem [#allocation6], %s1815_s11 }
  0x1b   : > { %s239_s17 = sshll.u32 %s233_s16, 4  ;;  %p1826_p7 = pnand %p2159_p5, %p78_p4  ;;  %s1830_s17 = int_to_ptr.vmem [resolvable:$true] %s239_s17 }
  0x1c   : > { %s1833_s7 = scalar_lea.sflag [#allocation7], %s229_s8 }
  0x1d   : > { %p2163_p10 = pneg %p1826_p7 }
  0x1f   : > { %s1821_s15 = scalar_lea.hbm %s2184_s1, %s1115_s12  ;;  %s1482_s14 = scalar_lea.hbm %s2184_s1, 3072 }
  0x20   : > { %s1477_s10 = scalar_lea.hbm %s1821_s15, 1024  ;;  %p1483_p13 = scmp.lt.u32.totalorder %s1821_s15, %s2184_s1 }
  0x21   : > { %p1478_p9 = scmp.ne.s32.totalorder %s1821_s15, %s1477_s10  ;;  %p1484_p2 = scmp.lt.u32.totalorder %s1482_s14, %s1477_s10 }
  0x22   : > { %p1486_p6 = scmp.lt.u32.totalorder %s1477_s10, %s1821_s15 }
  0x23   : > { %p1480_p11 = pnand %p2163_p10, %p1478_p9  ;;  %p1485_p4 = por %p1484_p2, %p1483_p13 }
  0x25   : > { %p1481_p12 = pneg %p1480_p11  ;;  %p1487_p5 = por %p1486_p6, %p1485_p4 }
  0x27   : > { %p1488_p3 = pnand %p1487_p5, %p1481_p12 }
  0x29   : > { %1491 = shalt.err (!%p1488_p3)
}
  0x2a   : > { %s1492_s8 = scalar_lea.vmem %s1830_s17, 1024  ;;  %s1695_s12 = smov [#allocation6]  }
  0x2b   : > { %p1493_p9 = scmp.ne.s32.totalorder %s1830_s17, %s1492_s8  ;;  %s1497_s13 = sshll.u32 %s1695_s12, 4  ;;  %s1498_s13 = int_to_ptr.vmem [resolvable:$false] %s1497_s13 }
  0x2c   : > { %s1499_s29 = scalar_lea.vmem %s1498_s13, 2048  ;;  %p1500_p8 = scmp.lt.s32.totalorder %s1830_s17, %s1498_s13 }
  0x2d   : > { %p1495_p11 = pnand %p1493_p9, %p2163_p10  ;;  %p1501_p13 = scmp.lt.s32.totalorder %s1499_s29, %s1492_s8 }
  0x2f   : > { %p1496_p0 = pneg %p1495_p11  ;;  %p1502_p2 = por %p1501_p13, %p1500_p8 }
  0x31   : > { %p1503_p4 = pnand %p1502_p2, %p1496_p0 }
  0x33   : > { %1506 = shalt.err (!%p1503_p4)
}
  0x34   : > { %s1696_s10 = smov 192   ;;  %s2161_s14 = smov 64  }
  0x35   : > { %s2164_s16 = smov 4   ;;  %p274_p0 = scmp.lt.s32.totalorder %s1693_s28, 7 }
  0x36   : > { %1349 = dma.hbm_to_vmem [thread:$0]  (!%p1826_p7), %s1821_s15, 1024, %s1830_s17, %s1833_s7, %s1696_s10, %s2161_s14, %s2164_s16  }
  0x37   : > { %p2186_p3 = scmp.ge.s32.totalorder %s1693_s28, 1  ;;  %s1871_s12 = sadd.s32 4294967295, %s1693_s28  }
  0x38   : > { %s1108_s13 = sadd.s32 4294967294, %s1693_s28   ;;  %s36_s29 = sadd.s32 1, %s1689_s27 }
  0x39   : > { %p1866_p5 = pnand %p2186_p3, %p274_p0  ;;  %s43_s1 = sadd.s32 1, %s1673_s23 }
  0x3a   : > { %s2227_s29 = smov (!%p1792_p1, %s36_s29), %s1689_s27  ;;  %p50_p8 = scmp.ne.s32.totalorder %s1673_s23, %s1669_s22 }
  0x3b   : > { %s2187_s8 = scalar_select %p1866_p5, 1, 0 }
  0x3c   : > { %p56_p12 = scmp.ne.s32.totalorder %s1669_s22, %s1665_s21  ;;  %p38_p6 = scmp.ge.s32.totalorder %s2227_s29, 2 }
  0x3d   : > { %p57_p9 = scmp.eq.s32.totalorder %s1871_s12, 0  ;;  %p2188_p11 = scmp.eq.s32.totalorder %s1693_s28, 0 }
  0x3e   : > { %p179_p2 = scmp.eq.s32.totalorder %s1871_s12, 5  ;;  %s2229_s29 = smov (%p38_p6, %s2227_s29), 0 }
  0x3f   : > { %p1886_p13 = por %p2188_p11, %p50_p8  ;;  %2190 = sst [smem:[#allocation19_spill]] %s2229_s29 }
  0x40   : > { %p1896_p1 = por %p57_p9, %p56_p12  ;;  %p2192_p4 = scmp.ne.s32.totalorder %s1657_s19, %s1653_s18 }
  0x41   : > { %s40_s10 = ssub.s32 %s1689_s27, %s2229_s29  ;;  %p1909_p3 = por %p179_p2, %p50_p8 }
  0x42   : > { %s2191_s30 = scalar_select %p1896_p1, 1, 0 }
  0x43   : > { %p1903_p0 = por %p2192_p4, %p57_p9  ;;  %p41_p11 = scmp.eq.s32.totalorder %s40_s10, 0 }
  0x44   : > { %s2194_s14 = scalar_select %p1909_p3, 1, 0 }
  0x45   : > { %s2193_s17 = scalar_select %p1903_p0, 1, 0 }
  0x46   : > { %p185_p10 = scmp.eq.s32.totalorder %s1108_s13, 5  ;;  %s208_s16 = sand.u32 1, %s1673_s23  }
  0x47   : > { %s1173_s9 = sshll.u32 %s1689_s27, 10  ;;  %s1111_s18 = sshll.u32 %s208_s16, 6 }
  0x48   : > { %s1916_s20 = scalar_select %p41_p11, %s1673_s23, %s43_s1  }
  0x49   : > { %p1921_p6 = por %p185_p10, %p56_p12  ;;  %s1928_s29 = scalar_lea.hbm %s2152_s0, %s1173_s9 }
  0x4a   : > { %2195 = sst [smem:[#allocation20_spill]] %s1916_s20  ;;  %p2197_p8 = scmp.lt.s32.totalorder %s1693_s28, 6 }
  0x4b   : > { %s2196_s5 = scalar_select %p1921_p6, 1, 0 }
  0x4c   : > { %p1934_p9 = pnand %p2197_p8, %p1886_p13  ;;  %s212_s13 = scalar_lea.vmem [#allocation3], %s1111_s18 }
  0x4d   : > { %s219_s10 = sshll.u32 %s212_s13, 4  ;;  %s1940_s27 = scalar_lea.sflag [#allocation4], %s208_s16  ;;  %s1938_s10 = int_to_ptr.vmem [resolvable:$true] %s219_s10 }
  0x4e   : > { %s1507_s4 = scalar_lea.hbm %s1928_s29, 1024  ;;  %p1509_p12 = pneg %p1934_p9 }
  0x4f   : > { %p1508_p10 = scmp.ne.s32.totalorder %s1928_s29, %s1507_s4  ;;  %s1512_s15 = scalar_lea.hbm %s2152_s0, 2048 }
  0x50   : > { %p1513_p13 = scmp.lt.u32.totalorder %s1928_s29, %s2152_s0  ;;  %p1514_p11 = scmp.lt.u32.totalorder %s1512_s15, %s1507_s4 }
  0x51   : > { %p1510_p2 = pnand %p1509_p12, %p1508_p10  ;;  %p1516_p6 = scmp.lt.u32.totalorder %s1507_s4, %s1928_s29 }
  0x52   : > { %p1515_p8 = por %p1514_p11, %p1513_p13 }
  0x53   : > { %p1511_p4 = pneg %p1510_p2 }
  0x54   : > { %p1517_p3 = por %p1516_p6, %p1515_p8 }
  0x56   : > { %p1518_p0 = pnand %p1517_p3, %p1511_p4 }
  0x58   : > { %1521 = shalt.err (!%p1518_p0)
}
  0x59   : > { %s1522_s16 = scalar_lea.vmem %s1938_s10, 1024  ;;  %s1699_s18 = smov [#allocation3]  }
  0x5a   : > { %p1523_p10 = scmp.ne.s32.totalorder %s1938_s10, %s1522_s16  ;;  %s1527_s13 = sshll.u32 %s1699_s18, 4  ;;  %s1528_s13 = int_to_ptr.vmem [resolvable:$false] %s1527_s13 }
  0x5b   : > { %s1529_s20 = scalar_lea.vmem %s1528_s13, 2048  ;;  %p1530_p5 = scmp.lt.s32.totalorder %s1938_s10, %s1528_s13 }
  0x5c   : > { %p1525_p2 = pnand %p1523_p10, %p1509_p12  ;;  %p1531_p13 = scmp.lt.s32.totalorder %s1529_s20, %s1522_s16 }
  0x5e   : > { %p1526_p1 = pneg %p1525_p2  ;;  %p1532_p11 = por %p1531_p13, %p1530_p5 }
  0x60   : > { %p1533_p6 = pnand %p1532_p11, %p1526_p1 }
  0x62   : > { %1536 = shalt.err (!%p1533_p6)
}
  0x63   : > { %s2199_s23 = smov 4   ;;  %s2200_s4 = smov 64  }
  0x64   : > { %1346 = dma.hbm_to_vmem [thread:$0]  (!%p1934_p9), %s1928_s29, 1024, %s1938_s10, %s1940_s27, %s2200_s4, %s2200_s4, %s2199_s23  }
  0x65   : > { %s1174_s25 = sshll.u32 %s1685_s26, 10  ;;  %s259_s9 = scalar_lea.vmem [#allocation8], %s1815_s11 }
  0x66   : > { %s266_s15 = sshll.u32 %s259_s9, 4  ;;  %s1976_s13 = scalar_lea.hbm %s2155_s3, %s1174_s25  ;;  %s1978_s15 = int_to_ptr.vmem [resolvable:$true] %s266_s15 }
  0x67   : > { %s1537_s1 = scalar_lea.hbm %s1976_s13, 1024  ;;  %p2201_p1 = pneg %p1826_p7 }
  0x68   : > { %p1538_p5 = scmp.ne.s32.totalorder %s1976_s13, %s1537_s1  ;;  %s1542_s29 = scalar_lea.hbm %s2155_s3, 3072 }
  0x69   : > { %p1543_p9 = scmp.lt.u32.totalorder %s1976_s13, %s2155_s3  ;;  %p1544_p12 = scmp.lt.u32.totalorder %s1542_s29, %s1537_s1 }
  0x6a   : > { %p1540_p0 = pnand %p1538_p5, %p2201_p1  ;;  %p1546_p8 = scmp.lt.u32.totalorder %s1537_s1, %s1976_s13 }
  0x6b   : > { %p1545_p4 = por %p1544_p12, %p1543_p9 }
  0x6c   : > { %p1541_p3 = pneg %p1540_p0 }
  0x6d   : > { %p1547_p10 = por %p1546_p8, %p1545_p4 }
  0x6f   : > { %p1548_p2 = pnand %p1547_p10, %p1541_p3 }
  0x71   : > { %1551 = shalt.err (!%p1548_p2)
}
  0x72   : > { %s1552_s25 = scalar_lea.vmem %s1978_s15, 1024  ;;  %p2202_p11 = pmov %p2201_p1 }
  0x73   : > { %p1553_p13 = scmp.ne.s32.totalorder %s1978_s15, %s1552_s25  ;;  %s1700_s9 = smov [#allocation8]  }
  0x74   : > { %s1557_s18 = sshll.u32 %s1700_s9, 4  ;;  %s1558_s18 = int_to_ptr.vmem [resolvable:$false] %s1557_s18 }
  0x75   : > { %p1555_p6 = pnand %p1553_p13, %p2202_p11  ;;  %s1559_s16 = scalar_lea.vmem %s1558_s18, 2048 }
  0x76   : > { %p1560_p1 = scmp.lt.s32.totalorder %s1978_s15, %s1558_s18  ;;  %p1561_p0 = scmp.lt.s32.totalorder %s1559_s16, %s1552_s25 }
  0x77   : > { %p1556_p5 = pneg %p1555_p6 }
  0x78   : > { %p1562_p9 = por %p1561_p0, %p1560_p1 }
  0x7a   : > { %p1563_p12 = pnand %p1562_p9, %p1556_p5 }
  0x7c   : > { %1566 = shalt.err (!%p1563_p12)
}
  0x7d   : > { %1352 = dma.hbm_to_vmem [thread:$0]  (!%p1826_p7), %s1976_s13, 1024, %s1978_s15, %s1833_s7, %s2200_s4, %s2200_s4, %s2199_s23  }
  0x7e   : > { %p2203_p3 = scmp.ne.s32.totalorder %s2187_s8, 0 }
  0x7f   : > { %s2010_s1 = sand.u32 (!%p2203_p3), 1, %s1669_s22   ;;  %p2204_p4 = scmp.ne.s32.totalorder (!%p2203_p3), %s2191_s30, 0 }
  0x80   : > { %278 = sbr.rel (%p2203_p3) target bundleno = 690 (0x2b2), region = 40  ;;  %s1120_s27 = sshll.u32 (!%p2203_p3), %s2010_s1, 6 }
  0x81   : > { %s281_s11 = scalar_lea.sflag (!%p2203_p3), [#allocation4], %s2010_s1  ;;  %s2014_s29 = scalar_lea.vmem (!%p2203_p3), [#allocation3], %s1120_s27 }
  0x87   : > { %1640 = dma.done.wait (%p2204_p4), %s281_s11, 1024  }
  0x88   : > { %1642 = vsyncadd (%p2204_p4), %s281_s11, 4294966272  ;;  %s289_s6 = sand.u32 1, %s1871_s12   ;;  %s291_s7 = sand.u32 1, %s1657_s19  }
  0x89   : > { %s1121_s8 = sshll.u32 %s291_s7, 6  ;;  %s290_s23 = scalar_lea.sflag [#allocation7], %s289_s6 }
  0x8a   : > { %s2022_s4 = scalar_lea.vmem [#allocation6], %s1121_s8  ;;  %p2205_p7 = scmp.ne.s32.totalorder %s2193_s17, 0 }
  0x8c   : > { %1644 = dma.done.wait (%p2205_p7), %s290_s23, 2048  }
  0x8d   : > { %1646 = vsyncadd (%p2205_p7), %s290_s23, 4294965248  ;;  %p343_p8 = scmp.lt.s32.totalorder %s1677_s24, 2  ;;  %s2036_s10 = scalar_lea.vmem [#allocation8], %s1121_s8 }
  0x8e   : > { %s2038_s20 = scalar_lea.vmem [#allocation9], %s1120_s27  ;;  %p1124_p10 = scmp.ne.s32.totalorder %s1677_s24, 0 }
  0x8f   : > { %s2030_s15 = scalar_select %p343_p8, %s1677_s24, 2 }
  0x90   : > { %352 = sbr.rel (%p1124_p10) target bundleno = 153 (0x99), region = 56  ;;  %v1701_v0 = vmov (!%p1124_p10), 0.0  }
  0x91   : > { %s345_s12 = scalar_lea.vmem %s2154_s2, %s2030_s15  ;;  %353 = vst [vmem:[#allocation2] sm:$0xff] (!%p1124_p10), %v1701_v0  ;;  %354 = vst [vmem:[#allocation2 + $0x8] sm:$0xff] (!%p1124_p10), %v1701_v0 }
  0x92   : > { %355 = vst [vmem:[#allocation2 + $0x10] sm:$0xff] (!%p1124_p10), %v1701_v0  ;;  %356 = vst [vmem:[#allocation2 + $0x18] sm:$0xff] (!%p1124_p10), %v1701_v0 }
  0x93   : > { %357 = vst [vmem:[#allocation2 + $0x20] sm:$0xff] (!%p1124_p10), %v1701_v0  ;;  %358 = vst [vmem:[#allocation2 + $0x28] sm:$0xff] (!%p1124_p10), %v1701_v0 }
  0x94   : > { %359 = vst [vmem:[#allocation2 + $0x30] sm:$0xff] (!%p1124_p10), %v1701_v0  ;;  %360 = vst [vmem:[#allocation2 + $0x38] sm:$0xff] (!%p1124_p10), %v1701_v0 }
  0x95   : > { %361 = vst [vmem:[#allocation2 + $0x40] sm:$0xff] (!%p1124_p10), %v1701_v0  ;;  %362 = vst [vmem:[#allocation2 + $0x48] sm:$0xff] (!%p1124_p10), %v1701_v0 }
  0x96   : > { %363 = vst [vmem:[#allocation2 + $0x50] sm:$0xff] (!%p1124_p10), %v1701_v0  ;;  %364 = vst [vmem:[#allocation2 + $0x58] sm:$0xff] (!%p1124_p10), %v1701_v0 }
  0x97   : > { %365 = vst [vmem:[#allocation2 + $0x60] sm:$0xff] %v1701_v0  ;;  %366 = vst [vmem:[#allocation2 + $0x68] sm:$0xff] %v1701_v0 }
  0x98   : > { %367 = vst [vmem:[#allocation2 + $0x70] sm:$0xff] %v1701_v0  ;;  %368 = vst [vmem:[#allocation2 + $0x78] sm:$0xff] %v1701_v0 }
  0x99 PF: > { %v1453_v1 = vld [vmem:[%s2022_s4] sm:$0xff]   ;;  %v1454_v2 = vld [vmem:[%s2022_s4 + $0x8] sm:$0xff]   ;;  %v1455_v3 = vld [vmem:[%s2022_s4 + $0x10] sm:$0xff]   ;;  %p1150_p2 = scmp.ne.s32.totalorder %s1677_s24, 2 }
  0x9a   : > { %1271 = vmatprep.subr.bf16.mxu0 %v1453_v1  ;;  %v1456_v4 = vld [vmem:[%s2022_s4 + $0x18] sm:$0xff]   ;;  %v1461_v5 = vld [vmem:[%s2014_s29] sm:$0xff]   ;;  %v1458_v7 = vld [vmem:[%s2022_s4 + $0x28] sm:$0xff]   ;;  %s2206_s16 = sld [smem:[#allocation22_spill]] (!%p1150_p2) }
  0x9b   : > { %1272 = vmatpush3.bf16.msra.mxu0 %v1453_v1  ;;  %1287 = vmatprep.mubr.bf16.mxu0 %v1461_v5  ;;  %v1457_v6 = vld [vmem:[%s2022_s4 + $0x20] sm:$0xff]   ;;  %v1470_v9 = vld [vmem:[%s2036_s10 + $0x8] sm:$0xff]   ;;  %v1459_v10 = vld [vmem:[%s2022_s4 + $0x30] sm:$0xff]  }
  0x9c   : > { %1273 = vmatprep.subr.bf16.mxu0 %v1454_v2  ;;  %v1469_v8 = vld [vmem:[%s2036_s10] sm:$0xff]   ;;  %v1471_v11 = vld [vmem:[%s2036_s10 + $0x10] sm:$0xff]   ;;  %v1460_v12 = vld [vmem:[%s2022_s4 + $0x38] sm:$0xff]  }
  0x9d   : > { %1303 = vmatprep.subr.bf16.mxu1 %v1469_v8  ;;  %v1472_v13 = vld [vmem:[%s2036_s10 + $0x18] sm:$0xff]   ;;  %v1473_v14 = vld [vmem:[%s2036_s10 + $0x20] sm:$0xff]   ;;  %v1462_v15 = vld [vmem:[%s2014_s29 + $0x8] sm:$0xff]  }
  0x9e   : > { %1304 = vmatpush3.bf16.msra.mxu1 %v1469_v8  ;;  %v1463_v16 = vld [vmem:[%s2014_s29 + $0x10] sm:$0xff]   ;;  %v1474_v17 = vld [vmem:[%s2036_s10 + $0x28] sm:$0xff]   ;;  %v1464_v18 = vld [vmem:[%s2014_s29 + $0x18] sm:$0xff]  }
  0x9f   : > { %1274 = vmatpush3.bf16.msra.mxu0 %v1454_v2  ;;  %1305 = vmatprep.subr.bf16.mxu1 %v1470_v9  ;;  %v1465_v19 = vld [vmem:[%s2014_s29 + $0x20] sm:$0xff]   ;;  %v1466_v20 = vld [vmem:[%s2014_s29 + $0x28] sm:$0xff]   ;;  %v1467_v21 = vld [vmem:[%s2014_s29 + $0x30] sm:$0xff]  }
  0xa0   : > { %1275 = vmatprep.subr.bf16.mxu0 %v1455_v3  ;;  %v1468_v22 = vld [vmem:[%s2014_s29 + $0x38] sm:$0xff]   ;;  %v1475_v23 = vld [vmem:[%s2036_s10 + $0x30] sm:$0xff]   ;;  %v1125_v25 = vld [vmem:[%s345_s12] ss:$0 sm:$0xff] }
  0xa1   : > { %v1476_v24 = vld [vmem:[%s2036_s10 + $0x38] sm:$0xff]  }
  0xa2   : > { %1306 = vmatpush3.bf16.msra.mxu1 %v1470_v9 }
  0xa3   : > { %1276 = vmatpush3.bf16.msra.mxu0 %v1455_v3  ;;  %1307 = vmatprep.subr.bf16.mxu1 %v1471_v11 }
  0xa4   : > { %1277 = vmatprep.subr.bf16.mxu0 %v1456_v4 }
  0xa6   : > { %1308 = vmatpush3.bf16.msra.mxu1 %v1471_v11 }
  0xa7   : > { %1278 = vmatpush3.bf16.msra.mxu0 %v1456_v4  ;;  %1309 = vmatprep.subr.bf16.mxu1 %v1472_v13 }
  0xa8   : > { %1279 = vmatprep.subr.bf16.mxu0 %v1457_v6 }
  0xaa   : > { %1310 = vmatpush3.bf16.msra.mxu1 %v1472_v13 }
  0xab   : > { %1280 = vmatpush3.bf16.msra.mxu0 %v1457_v6  ;;  %1311 = vmatprep.subr.bf16.mxu1 %v1473_v14 }
  0xac   : > { %1281 = vmatprep.subr.bf16.mxu0 %v1458_v7 }
  0xae   : > { %1312 = vmatpush3.bf16.msra.mxu1 %v1473_v14 }
  0xaf   : > { %1282 = vmatpush3.bf16.msra.mxu0 %v1458_v7  ;;  %1313 = vmatprep.subr.bf16.mxu1 %v1474_v17 }
  0xb0   : > { %1283 = vmatprep.subr.bf16.mxu0 %v1459_v10 }
  0xb2   : > { %1314 = vmatpush3.bf16.msra.mxu1 %v1474_v17 }
  0xb3   : > { %1284 = vmatpush3.bf16.msra.mxu0 %v1459_v10  ;;  %1315 = vmatprep.subr.bf16.mxu1 %v1475_v23 }
  0xb4   : > { %1285 = vmatprep.subr.bf16.mxu0 %v1460_v12 }
  0xb6   : > { %1316 = vmatpush3.bf16.msra.mxu1 %v1475_v23 }
  0xb7   : > { %1286 = vmatpush3.bf16.msra.mxu0 %v1460_v12  ;;  %1317 = vmatprep.subr.bf16.mxu1 %v1476_v24 }
  0xba   : > { %1288 = vmatmul.mubr.bf16.vlgmr.msra.gmra.mrb[0].mxu0 %v1462_v15  ;;  %1318 = vmatpush3.bf16.msra.mxu1 %v1476_v24  ;;  %v634_v24 = vld [vmem:[#allocation2 + $0x8] sm:$0xff] }
  0xbb   : > { %1291 = vmatprep.mubr.bf16.mxu0 %v1463_v16 }
  0xc2   : > { %1292 = vmatmul.mubr.bf16.gmra.mrb[4].mxu0 %v1464_v18  ;;  %v635_v18 = vld [vmem:[#allocation2 + $0x10] sm:$0xff] }
  0xc3   : > { %1295 = vmatprep.mubr.bf16.mxu0 %v1465_v19  ;;  %v633_v19 = vld [vmem:[#allocation2] sm:$0xff] }
  0xca   : > { %1296 = vmatmul.mubr.bf16.gmra.mrb[8].mxu0 %v1466_v20 }
  0xcb   : > { %1299 = vmatprep.mubr.bf16.mxu0 %v1467_v21  ;;  %v636_v21 = vld [vmem:[#allocation2 + $0x18] sm:$0xff] }
  0xd2   : > { %1300 = vmatmul.mubr.bf16.gmra.mrb[12].mxu0 %v1468_v22 }
 0x18d   : > { %v1289_v26 = vpop.f32.mrb[0].mxu0 }
 0x18e   : > { %v547_v27 = vadd.f32 %v1289_v26, %v1125_v25  ;;  %v538_v28 = vpop.f32.mrb[1].mxu0 }
 0x18f   : > { %v539_v29 = vadd.f32 %v1125_v25, %v538_v28  ;;  %v1290_v30 = vpop.f32.mrb[2].mxu0 }
 0x190   : > { %v550_v31 = vadd.f32 %v1290_v30, %v1125_v25  ;;  %v541_v32 = vpop.f32.mrb[3].mxu0  ;;  %v603_v34 = vmax.f32 %v547_v27, 0.0  ;;  %v639_v30 = vld [vmem:[#allocation2 + $0x30] sm:$0xff] }
 0x191   : > { %v542_v33 = vadd.f32 %v1125_v25, %v541_v32  ;;  %v601_v36 = vmax.f32 %v539_v29, 0.0 }
 0x192   : > { %v604_v35 = vmax.f32 %v550_v31, 0.0  ;;  %v637_v31 = vld [vmem:[#allocation2 + $0x20] sm:$0xff] }
 0x193   : > { %v602_v37 = vmax.f32 %v542_v33, 0.0  ;;  %v640_v33 = vld [vmem:[#allocation2 + $0x38] sm:$0xff] }
 0x194   : > { %v650_v38 = vpack.c.bf16 %v604_v35, %v603_v34 }
 0x195   : > { %v1293_v39 = vpop.f32.mrb[4].mxu0  ;;  %v649_v40 = vpack.c.bf16 %v602_v37, %v601_v36  ;;  %v638_v36 = vld [vmem:[#allocation2 + $0x28] sm:$0xff] }
 0x196   : > { %v563_v41 = vadd.f32 %v1293_v39, %v1125_v25  ;;  %v554_v42 = vpop.f32.mrb[5].mxu0 }
 0x197   : > { %v555_v43 = vadd.f32 %v1125_v25, %v554_v42  ;;  %v1294_v44 = vpop.f32.mrb[6].mxu0  ;;  %1319 = vmatprep.mubr.bf16.mxu1 %v649_v40  ;;  %v643_v42 = vld [vmem:[#allocation2 + $0x50] sm:$0xff] }
 0x198   : > { %v566_v45 = vadd.f32 %v1294_v44, %v1125_v25  ;;  %v557_v46 = vpop.f32.mrb[7].mxu0  ;;  %1320 = vmatmul.mubr.bf16.vlgmr.msra.gmra.mrb[0].mxu1 %v650_v38  ;;  %v607_v48 = vmax.f32 %v563_v41, 0.0 }
 0x199   : > { %v558_v47 = vadd.f32 %v1125_v25, %v557_v46  ;;  %v605_v50 = vmax.f32 %v555_v43, 0.0  ;;  %v641_v43 = vld [vmem:[#allocation2 + $0x40] sm:$0xff] }
 0x19a   : > { %v608_v49 = vmax.f32 %v566_v45, 0.0  ;;  %v644_v45 = vld [vmem:[#allocation2 + $0x58] sm:$0xff] }
 0x19b   : > { %v606_v51 = vmax.f32 %v558_v47, 0.0 }
 0x19c   : > { %v652_v52 = vpack.c.bf16 %v608_v49, %v607_v48  ;;  %v642_v48 = vld [vmem:[#allocation2 + $0x48] sm:$0xff] }
 0x19d   : > { %v651_v53 = vpack.c.bf16 %v606_v51, %v605_v50  ;;  %v1297_v54 = vpop.f32.mrb[8].mxu0 }
 0x19e   : > { %v579_v55 = vadd.f32 %v1297_v54, %v1125_v25  ;;  %v570_v56 = vpop.f32.mrb[9].mxu0  ;;  %v647_v54 = vld [vmem:[#allocation2 + $0x70] sm:$0xff] }
 0x19f   : > { %v571_v57 = vadd.f32 %v1125_v25, %v570_v56  ;;  %v1298_v58 = vpop.f32.mrb[10].mxu0  ;;  %1323 = vmatprep.mubr.bf16.mxu1 %v651_v53 }
 0x1a0   : > { %v582_v59 = vadd.f32 %v1298_v58, %v1125_v25  ;;  %v573_v60 = vpop.f32.mrb[11].mxu0  ;;  %1324 = vmatmul.mubr.bf16.gmra.mrb[4].mxu1 %v652_v52  ;;  %v611_v62 = vmax.f32 %v579_v55, 0.0  ;;  %v645_v55 = vld [vmem:[#allocation2 + $0x60] sm:$0xff] }
 0x1a1   : > { %v574_v61 = vadd.f32 %v1125_v25, %v573_v60  ;;  %v609_v0 = vmax.f32 %v571_v57, 0.0  ;;  %v648_v57 = vld [vmem:[#allocation2 + $0x78] sm:$0xff]  ;;  %v646_v60 = vld [vmem:[#allocation2 + $0x68] sm:$0xff] }
 0x1a2   : > { %v612_v63 = vmax.f32 %v582_v59, 0.0 }
 0x1a3   : > { %v610_v1 = vmax.f32 %v574_v61, 0.0 }
 0x1a4   : > { %v654_v2 = vpack.c.bf16 %v612_v63, %v611_v62 }
 0x1a5   : > { %v653_v3 = vpack.c.bf16 %v610_v1, %v609_v0  ;;  %v1301_v4 = vpop.f32.mrb[12].mxu0 }
 0x1a6   : > { %v595_v5 = vadd.f32 %v1301_v4, %v1125_v25  ;;  %v586_v6 = vpop.f32.mrb[13].mxu0  ;;  %v1151_v4 = vld [vmem:[%s2206_s16] ss:$0 sm:$0xff] (!%p1150_p2) }
 0x1a7   : > { %v587_v7 = vadd.f32 %v1125_v25, %v586_v6  ;;  %v1302_v8 = vpop.f32.mrb[14].mxu0  ;;  %1327 = vmatprep.mubr.bf16.mxu1 %v653_v3 }
 0x1a8   : > { %v598_v9 = vadd.f32 %v1302_v8, %v1125_v25  ;;  %v589_v10 = vpop.f32.mrb[15].mxu0  ;;  %1328 = vmatmul.mubr.bf16.gmra.mrb[8].mxu1 %v654_v2  ;;  %v615_v12 = vmax.f32 %v595_v5, 0.0 }
 0x1a9   : > { %v590_v11 = vadd.f32 %v1125_v25, %v589_v10  ;;  %v613_v14 = vmax.f32 %v587_v7, 0.0 }
 0x1aa   : > { %v616_v13 = vmax.f32 %v598_v9, 0.0 }
 0x1ab   : > { %v614_v15 = vmax.f32 %v590_v11, 0.0 }
 0x1ac   : > { %v656_v16 = vpack.c.bf16 %v616_v13, %v615_v12 }
 0x1ad   : > { %v655_v17 = vpack.c.bf16 %v614_v15, %v613_v14 }
 0x1af   : > { %1331 = vmatprep.mubr.bf16.mxu1 %v655_v17 }
 0x1b0   : > { %1332 = vmatmul.mubr.bf16.gmra.mrb[12].mxu1 %v656_v16 }
 0x26b   : > { %v1321_v20 = vpop.f32.mrb[0].mxu1 }
 0x26c   : > { %v804_v22 = vadd.f32 %v1321_v20, %v635_v18  ;;  %v739_v23 = vpop.f32.mrb[1].mxu1 }
 0x26d   : > { %v802_v26 = vadd.f32 %v739_v23, %v633_v19  ;;  %v1322_v27 = vpop.f32.mrb[2].mxu1 }
 0x26e   : > { %820 = vst [vmem:[#allocation2 + $0x10] sm:$0xff] %v804_v22  ;;  %v805_v28 = vadd.f32 %v1322_v27, %v636_v21  ;;  %v742_v25 = vpop.f32.mrb[3].mxu1 }
 0x26f   : > { %818 = vst [vmem:[#allocation2] sm:$0xff] %v802_v26  ;;  %v803_v29 = vadd.f32 %v742_v25, %v634_v24 }
 0x270   : > { %821 = vst [vmem:[#allocation2 + $0x18] sm:$0xff] %v805_v28 }
 0x271   : > { %819 = vst [vmem:[#allocation2 + $0x8] sm:$0xff] %v803_v29 }
 0x273   : > { %v1325_v32 = vpop.f32.mrb[4].mxu1 }
 0x274   : > { %v808_v34 = vadd.f32 %v1325_v32, %v639_v30  ;;  %v755_v35 = vpop.f32.mrb[5].mxu1 }
 0x275   : > { %v806_v37 = vadd.f32 %v755_v35, %v637_v31  ;;  %v1326_v38 = vpop.f32.mrb[6].mxu1  ;;  %v840_v7 = vld [vmem:[#allocation2 + $0x10] sm:$0xff] (!%p1150_p2) }
 0x276   : > { %824 = vst [vmem:[#allocation2 + $0x30] sm:$0xff] %v808_v34  ;;  %v809_v39 = vadd.f32 %v1326_v38, %v640_v33  ;;  %v758_v40 = vpop.f32.mrb[7].mxu1  ;;  %v838_v2 = vld [vmem:[#allocation2] sm:$0xff] (!%p1150_p2)  ;;  %v863_v10 = vadd.f32 (!%p1150_p2), %v1151_v4, %v840_v7 }
 0x277   : > { %822 = vst [vmem:[#allocation2 + $0x20] sm:$0xff] %v806_v37  ;;  %v807_v41 = vadd.f32 %v758_v40, %v638_v36  ;;  %v861_v5 = vadd.f32 (!%p1150_p2), %v1151_v4, %v838_v2  ;;  %v841_v8 = vld [vmem:[#allocation2 + $0x18] sm:$0xff] (!%p1150_p2) }
 0x278   : > { %825 = vst [vmem:[#allocation2 + $0x38] sm:$0xff] %v809_v39  ;;  %v839_v3 = vld [vmem:[#allocation2 + $0x8] sm:$0xff] (!%p1150_p2)  ;;  %v864_v11 = vadd.f32 (!%p1150_p2), %v1151_v4, %v841_v8 }
 0x279   : > { %823 = vst [vmem:[#allocation2 + $0x28] sm:$0xff] %v807_v41  ;;  %v862_v6 = vadd.f32 (!%p1150_p2), %v1151_v4, %v839_v3 }
 0x27a   : > { %v1200_v23 = vpack.c.bf16 (!%p1150_p2), %v864_v11, %v863_v10 }
 0x27b   : > { %v1329_v44 = vpop.f32.mrb[8].mxu1  ;;  %v1195_v16 = vpack.c.bf16 (!%p1150_p2), %v862_v6, %v861_v5 }
 0x27c   : > { %v812_v46 = vadd.f32 %v1329_v44, %v643_v42  ;;  %v771_v47 = vpop.f32.mrb[9].mxu1  ;;  %1232 = vst [vmem:[%s2038_s20 + $0x8] sm:$0xff] (!%p1150_p2), %v1200_v23  }
 0x27d   : > { %v810_v49 = vadd.f32 %v771_v47, %v641_v43  ;;  %v1330_v50 = vpop.f32.mrb[10].mxu1  ;;  %v844_v14 = vld [vmem:[#allocation2 + $0x30] sm:$0xff] (!%p1150_p2)  ;;  %1196 = vst [vmem:[%s2038_s20] sm:$0xff] (!%p1150_p2), %v1195_v16  }
 0x27e   : > { %828 = vst [vmem:[#allocation2 + $0x50] sm:$0xff] %v812_v46  ;;  %v813_v51 = vadd.f32 %v1330_v50, %v644_v45  ;;  %v774_v52 = vpop.f32.mrb[11].mxu1  ;;  %v842_v9 = vld [vmem:[#allocation2 + $0x20] sm:$0xff] (!%p1150_p2)  ;;  %v867_v18 = vadd.f32 (!%p1150_p2), %v1151_v4, %v844_v14 }
 0x27f   : > { %826 = vst [vmem:[#allocation2 + $0x40] sm:$0xff] %v810_v49  ;;  %v811_v53 = vadd.f32 %v774_v52, %v642_v48  ;;  %v865_v13 = vadd.f32 (!%p1150_p2), %v1151_v4, %v842_v9  ;;  %v845_v15 = vld [vmem:[#allocation2 + $0x38] sm:$0xff] (!%p1150_p2) }
 0x280   : > { %829 = vst [vmem:[#allocation2 + $0x58] sm:$0xff] %v813_v51  ;;  %v843_v12 = vld [vmem:[#allocation2 + $0x28] sm:$0xff] (!%p1150_p2)  ;;  %v868_v19 = vadd.f32 (!%p1150_p2), %v1151_v4, %v845_v15 }
 0x281   : > { %827 = vst [vmem:[#allocation2 + $0x48] sm:$0xff] %v811_v53  ;;  %v866_v17 = vadd.f32 (!%p1150_p2), %v1151_v4, %v843_v12 }
 0x282   : > { %v1210_v31 = vpack.c.bf16 (!%p1150_p2), %v868_v19, %v867_v18 }
 0x283   : > { %v1333_v56 = vpop.f32.mrb[12].mxu1  ;;  %837 = sbr.rel (%p1150_p2) target bundleno = 662 (0x296), region = 60  ;;  %v1205_v30 = vpack.c.bf16 (!%p1150_p2), %v866_v17, %v865_v13 }
 0x284   : > { %v816_v58 = vadd.f32 %v1333_v56, %v647_v54  ;;  %v787_v59 = vpop.f32.mrb[13].mxu1  ;;  %1234 = vst [vmem:[%s2038_s20 + $0x18] sm:$0xff] (!%p1150_p2), %v1210_v31  }
 0x285   : > { %v814_v61 = vadd.f32 %v787_v59, %v645_v55  ;;  %v1334_v62 = vpop.f32.mrb[14].mxu1  ;;  %v848_v22 = vld [vmem:[#allocation2 + $0x50] sm:$0xff] (!%p1150_p2)  ;;  %1233 = vst [vmem:[%s2038_s20 + $0x10] sm:$0xff] (!%p1150_p2), %v1205_v30  }
 0x286   : > { %832 = vst [vmem:[#allocation2 + $0x70] sm:$0xff] %v816_v58  ;;  %v817_v63 = vadd.f32 %v1334_v62, %v648_v57  ;;  %v790_v0 = vpop.f32.mrb[15].mxu1  ;;  %v846_v20 = vld [vmem:[#allocation2 + $0x40] sm:$0xff] (!%p1150_p2)  ;;  %v871_v28 = vadd.f32 (!%p1150_p2), %v1151_v4, %v848_v22 }
 0x287   : > { %830 = vst [vmem:[#allocation2 + $0x60] sm:$0xff] %v814_v61  ;;  %v815_v1 = vadd.f32 %v790_v0, %v646_v60  ;;  %v869_v24 = vadd.f32 (!%p1150_p2), %v1151_v4, %v846_v20  ;;  %v849_v27 = vld [vmem:[#allocation2 + $0x58] sm:$0xff] (!%p1150_p2) }
 0x288   : > { %833 = vst [vmem:[#allocation2 + $0x78] sm:$0xff] %v817_v63  ;;  %v847_v21 = vld [vmem:[#allocation2 + $0x48] sm:$0xff] (!%p1150_p2)  ;;  %v872_v32 = vadd.f32 (!%p1150_p2), %v1151_v4, %v849_v27 }
 0x289   : > { %831 = vst [vmem:[#allocation2 + $0x68] sm:$0xff] %v815_v1  ;;  %v870_v26 = vadd.f32 (!%p1150_p2), %v1151_v4, %v847_v21 }
 0x28a   : > { %v1220_v40 = vpack.c.bf16 %v872_v32, %v871_v28 }
 0x28b   : > { %v1215_v36 = vpack.c.bf16 %v870_v26, %v869_v24 }
 0x28c   : > { %1236 = vst [vmem:[%s2038_s20 + $0x28] sm:$0xff] %v1220_v40  }
 0x28d   : > { %v852_v34 = vld [vmem:[#allocation2 + $0x70] sm:$0xff]  ;;  %1235 = vst [vmem:[%s2038_s20 + $0x20] sm:$0xff] %v1215_v36  }
 0x28e   : > { %v850_v25 = vld [vmem:[#allocation2 + $0x60] sm:$0xff]  ;;  %v875_v38 = vadd.f32 %v1151_v4, %v852_v34 }
 0x28f   : > { %v873_v33 = vadd.f32 %v1151_v4, %v850_v25  ;;  %v853_v35 = vld [vmem:[#allocation2 + $0x78] sm:$0xff] }
 0x290   : > { %v851_v29 = vld [vmem:[#allocation2 + $0x68] sm:$0xff]  ;;  %v876_v39 = vadd.f32 %v1151_v4, %v853_v35 }
 0x291   : > { %v874_v37 = vadd.f32 %v1151_v4, %v851_v29 }
 0x292   : > { %v1230_v42 = vpack.c.bf16 %v876_v39, %v875_v38 }
 0x293   : > { %v1225_v41 = vpack.c.bf16 %v874_v37, %v873_v33 }
 0x294   : > { %1238 = vst [vmem:[%s2038_s20 + $0x38] sm:$0xff] %v1230_v42  }
 0x295   : > { %1237 = vst [vmem:[%s2038_s20 + $0x30] sm:$0xff] %v1225_v41  }
 0x296 PF: > { %s2207_s24 = sld [smem:[#allocation15_spill]]  ;;  %s971_s8 = sshll.u32 %s2038_s20, 4  ;;  %s2089_s8 = int_to_ptr.vmem [resolvable:$true] %s971_s8 }
 0x297   : > { %s2208_s6 = sld [smem:[#allocation23_spill]]  ;;  %s958_s23 = scalar_lea.sflag [#allocation5], %s2010_s1 }
 0x298   : > { %s1567_s4 = scalar_lea.vmem %s2089_s8, 1024  ;;  %p2209_p11 = scmp.ne.s32.totalorder %s2194_s14, 0 }
 0x299   : > { %p1568_p13 = scmp.ne.s32.totalorder %s2089_s8, %s1567_s4  ;;  %s1702_s15 = smov [#allocation9]  }
 0x29a   : > { %s1571_s30 = sshll.u32 %s1702_s15, 4  ;;  %s1572_s30 = int_to_ptr.vmem [resolvable:$false] %s1571_s30 }
 0x29b   : > { %p1569_p6 = pnand %p1568_p13, %p2209_p11  ;;  %s1573_s13 = scalar_lea.vmem %s1572_s30, 2048 }
 0x29c   : > { %s1191_s27 = sshll.u32 %s2207_s24, 10  ;;  %p1574_p1 = scmp.lt.s32.totalorder %s2089_s8, %s1572_s30 }
 0x29d   : > { %s2086_s7 = scalar_lea.hbm %s2208_s6, %s1191_s27  ;;  %p1570_p5 = pneg %p1569_p6 }
 0x29e   : > { %p1575_p0 = scmp.lt.s32.totalorder %s1573_s13, %s1567_s4 }
 0x2a0   : > { %p1576_p9 = por %p1575_p0, %p1574_p1 }
 0x2a2   : > { %p1577_p12 = pnand %p1576_p9, %p1570_p5 }
 0x2a4   : > { %1580 = shalt.err (!%p1577_p12)
}
 0x2a5   : > { %s1581_s12 = scalar_lea.hbm %s2086_s7, 1024  ;;  %s1585_s17 = scalar_lea.hbm %s2208_s6, 2048 }
 0x2a6   : > { %p1582_p3 = scmp.ne.s32.totalorder %s2086_s7, %s1581_s12  ;;  %p1586_p8 = scmp.lt.u32.totalorder %s2086_s7, %s2208_s6 }
 0x2a7   : > { %p1587_p10 = scmp.lt.u32.totalorder %s1585_s17, %s1581_s12  ;;  %p1589_p13 = scmp.lt.u32.totalorder %s1581_s12, %s2086_s7 }
 0x2a8   : > { %p1583_p4 = pnand %p1582_p3, %p2209_p11 }
 0x2a9   : > { %p1588_p2 = por %p1587_p10, %p1586_p8 }
 0x2aa   : > { %p1584_p7 = pneg %p1583_p4 }
 0x2ab   : > { %p1590_p6 = por %p1589_p13, %p1588_p2 }
 0x2ad   : > { %p1591_p5 = pnand %p1590_p6, %p1584_p7 }
 0x2af   : > { %1594 = shalt.err (!%p1591_p5)
}
 0x2b0   : > { %s1703_s18 = smov 64   ;;  %s1704_s16 = smov 4  }
 0x2b1   : > { %1341 = dma.vmem_to_hbm [thread:$0]  (%p2209_p11), %s2089_s8, 1024, %s2086_s7, %s958_s23, %s1703_s18, %s1703_s18, %s1704_s16  }
 0x2b2 PF: > { %p1358_p1 = scmp.ge.s32.totalorder %s1693_s28, 2  ;;  %s986_s24 = sand.u32 1, %s1665_s21  }
 0x2b3   : > { %p2210_p0 = scmp.ne.s32.totalorder %s2196_s5, 0  ;;  %s987_s27 = scalar_lea.sflag [#allocation5], %s986_s24 }
 0x2b5   : > { %p1354_p9 = pnand %p1358_p1, %p2210_p0 }
 0x2b7   : > { %1648 = dma.done.wait (!%p1354_p9), %s987_s27, 1024  }
 0x2b8   : > { %1650 = vsyncadd (!%p1354_p9), %s987_s27, 4294966272  ;;  %s24_s28 = sadd.s32 1, %s1693_s28   ;;  %s2211_s11 = sld [smem:[#allocation13_spill]] }
 0x2b9   : > { %p21_p12 = scmp.ge.s32.totalorder %s24_s28, 8   ;;  %s2212_s20 = sld [smem:[#allocation18_spill]] }
 0x2ba   : > { %s2213_s14 = sld [smem:[#allocation14_spill]]  ;;  %s2214_s23 = sld [smem:[#allocation20_spill]] }
 0x2bb   : > { %s2215_s25 = sld [smem:[#allocation16_spill]]  ;;  %s2216_s1 = sld [smem:[#allocation17_spill]] }
 0x2bc   : > { %s2217_s27 = sld [smem:[#allocation19_spill]]  ;;  %s2218_s18 = smov %s1657_s19 }
 0x2bd   : > { %s2220_s21 = smov %s1669_s22  ;;  %s2222_s24 = smov %s1685_s26 }
 0x2be   : > { %s2219_s19 = smov %s2211_s11  ;;  %23 = sbr.rel (!%p21_p12) target bundleno = 15 (0xf), region = 120 }
 0x2c0   : > { %s2221_s22 = smov %s2213_s14 }
 0x2c1   : > { %s2223_s26 = smov %s2216_s1 }
 0x2c5   :  { %992 = vsyncpa [#allocation4], 1 }
 0x2c6   :  { %994 = vsyncpa [#allocation4 + $0x1], 1 }
 0x2c7   :  { %995 = vsyncpa [#allocation7], 1 }
 0x2c8   :  { %997 = vsyncpa [#allocation7 + $0x1], 1 }
 0x2c9   :  { %998 = vsyncpa [#allocation5], 1 }
 0x2ca   :  { %1000 = vsyncpa [#allocation5 + $0x1], 1 }

</bundles_post_ra>
